<compile_context>
chip_gen: v7x
topology: tpu7x:2x2x1
jax: 0.10.0
libtpu: 0.0.40
codegen_flags: <defaults>
</compile_context>

<pallas_src>
import math
import functools

import jax
import jax.numpy as jnp
from jax.experimental import pallas as pl
from jax.experimental.pallas import tpu as pltpu


def _round_up(x: int, m: int) -> int:
    return ((x + m - 1) // m) * m


def _apply_activation(y, activation, alpha_ref):
    if activation == "prelu":
        a = alpha_ref[0]
        return jnp.where(y >= 0, y, a * y)
    if activation == "leakyrelu":
        return jnp.where(y >= 0, y, 0.2 * y)
    if activation == "tanh":
        return jnp.tanh(y)
    return y


# ----------------------------- kernels -------------------------------------


def _make_conv_bias_act_kernel(activation):
    """No-BN path: one im2col MXU matmul + bias + activation per (batch, hw) tile."""

    def kernel(xt_ref, w_ref, b_ref, alpha_ref, out_ref):
        acc = jnp.dot(w_ref[...], xt_ref[0], preferred_element_type=jnp.float32)
        acc = acc + b_ref[...]                         # (Coutp, 1) broadcast
        acc = _apply_activation(acc, activation, alpha_ref)
        out_ref[0] = acc.astype(out_ref.dtype)

    return kernel


def _make_fused_bn_kernel(activation, num_t, m_total, eps):
    """Fused BN path: grid = (2 phases, N, num_t) all 'arbitrary'.

    phase 0: conv matmul per tile -> VMEM scratch, accumulate sum/sumsq.
    phase 1 (first step): fold batch stats + gamma/beta/eps into scale/shift.
    phase 1: y*scale + shift + activation, stream output (lane-dense tiles).
    """
    inv_m = 1.0 / float(m_total)

    def kernel(xt_ref, w_ref, gamma_ref, beta_ref, alpha_ref, out_ref,
               conv_buf, sum_ref, ssq_ref, scale_ref, shift_ref):
        p = pl.program_id(0)
        b = pl.program_id(1)
        j = pl.program_id(2)
        slot = b * num_t + j

        @pl.when(p == 0)
        def _phase0():
            @pl.when(jnp.logical_and(b == 0, j == 0))
            def _init():
                sum_ref[...] = jnp.zeros_like(sum_ref)
                ssq_ref[...] = jnp.zeros_like(ssq_ref)

            acc = jnp.dot(w_ref[...], xt_ref[0],
                          preferred_element_type=jnp.float32)
            sum_ref[...] += jnp.sum(acc, axis=1, keepdims=True)   # lane-axis sums
            ssq_ref[...] += jnp.sum(acc * acc, axis=1, keepdims=True)
            conv_buf[slot] = acc                      # stays in VMEM, no HBM trip

        @pl.when(p == 1)
        def _phase1():
            @pl.when(jnp.logical_and(b == 0, j == 0))
            def _fold():
                mean = sum_ref[...] * inv_m
                var = jnp.maximum(ssq_ref[...] * inv_m - mean * mean, 0.0)
                scale = gamma_ref[...] * jax.lax.rsqrt(var + eps)
                scale_ref[...] = scale
                shift_ref[...] = beta_ref[...] - mean * scale

            y = conv_buf[slot] * scale_ref[...] + shift_ref[...]
            y = _apply_activation(y, activation, alpha_ref)
            out_ref[0] = y.astype(out_ref.dtype)

    return kernel


def _conv_stats_kernel(xt_ref, w_ref, conv_ref, sum_ref, ssq_ref):
    """Fallback pass 1 (conv result too big for VMEM): conv + per-tile partials."""
    acc = jnp.dot(w_ref[...], xt_ref[0], preferred_element_type=jnp.float32)
    conv_ref[0] = acc
    sum_ref[0, 0] = jnp.sum(acc, axis=1, keepdims=True)    # direct stores, no concat
    ssq_ref[0, 0] = jnp.sum(acc * acc, axis=1, keepdims=True)


def _make_scale_shift_act_kernel(activation):
    """Fallback pass 2: fused BN scale/shift + activation."""

    def kernel(y_ref, scale_ref, shift_ref, alpha_ref, out_ref):
        y = y_ref[0] * scale_ref[...] + shift_ref[...]
        y = _apply_activation(y, activation, alpha_ref)
        out_ref[0] = y.astype(out_ref.dtype)

    return kernel


# ----------------------------- wrapper --------------------------------------


def conv_block_forward(
    x_nchw,
    weight_oikk,
    bias,
    gamma,
    beta,
    alpha,
    *,
    kernel_size: int,
    stride: int = 1,
    activation=None,
    is_bn: bool = False,
    tile_m: int = 2048,
    eps: float = 1e-5,
    fuse_vmem_budget: int = 20 * 1024 * 1024,   # conv scratch cap (safe on v7x 64 MiB)
):
    """Forward pass of ConvolutionalBlock.  x_nchw: (N, Cin, H, W) float32."""
    n, cin, h, w = x_nchw.shape
    cout = weight_oikk.shape[0]
    k = kernel_size
    pad = k // 2

    hout = (h + 2 * pad - k) // stride + 1
    wout = (w + 2 * pad - k) // stride + 1
    hw = hout * wout
    m_total = n * hw
    ck = cin * k * k

    # TPU-friendly padded sizes.
    ckp = _round_up(ck, 8)
    coutp = _round_up(cout, 8)

    # Big lane-dense tiles (amortize per-grid-step overhead), clamped per-image.
    tile_hw = min(_round_up(max(tile_m, 128), 128), _round_up(hw, 128))
    hwp = _round_up(hw, tile_hw)
    # Keep >=2 parallel grid steps when possible so v7x's two TensorCores both
    # get work (v5e/v6e have a single core -> just use the biggest tile).
    if n * (hwp // tile_hw) < 2 and tile_hw > 128:
        tile_hw = max(128, _round_up(tile_hw // 2, 128))
        hwp = _round_up(hw, tile_hw)
    num_t = hwp // tile_hw

    # ---- glue: per-batch im2col directly in (N, K*K*Cin, HW) layout (no transposes) ----
    x_p = jnp.pad(x_nchw.astype(jnp.float32),
                  ((0, 0), (0, 0), (pad, pad), (pad, pad)))
    cols = []
    for kh in range(k):
        for kw in range(k):
            v = x_p[:, :,
                    kh: kh + (hout - 1) * stride + 1: stride,
                    kw: kw + (wout - 1) * stride + 1: stride]   # (N, Cin, Hout, Wout)
            cols.append(v.reshape(n, cin, hw))
    xt = jnp.concatenate(cols, axis=1)                # (N, CK, HW), tap-major / cin-minor
    xt = jnp.pad(xt, ((0, 0), (0, ckp - ck), (0, hwp - hw)))    # zeros -> exact stats

    # weight: (Cout, Cin, K, K) -> (Cout, K*K*Cin) matching the contraction order.
    wt = jnp.transpose(weight_oikk, (0, 2, 3, 1)).reshape(cout, ck)
    wt = jnp.pad(wt, ((0, coutp - cout), (0, ckp - ck))).astype(jnp.float32)

    alpha_arr = jnp.asarray(alpha, jnp.float32).reshape(1)

    conv_buf_bytes = 4 * n * coutp * hwp
    fuse = is_bn and conv_buf_bytes <= fuse_vmem_budget

    # Explicit scoped-VMEM limit (v5e default is only 16 MiB); capped well under
    # v7x's 64 MiB physical VMEM.
    est = 4 * (3 * ckp * tile_hw + 3 * coutp * tile_hw + 2 * coutp * ckp)
    if fuse:
        est += conv_buf_bytes
    vmem_limit = int(min(max(est + (4 << 20), 16 << 20), 48 << 20))

    smem_spec = pl.BlockSpec(memory_space=pltpu.MemorySpace.SMEM)
    cparams_par = pltpu.CompilerParams(
        dimension_semantics=("parallel", "parallel"),
        vmem_limit_bytes=vmem_limit)

    out_shape = jax.ShapeDtypeStruct((n, coutp, hwp), jnp.float32)

    if not is_bn:
        bias_p = jnp.pad(bias.astype(jnp.float32),
                         (0, coutp - cout)).reshape(coutp, 1)
        out_t = pl.pallas_call(
            _make_conv_bias_act_kernel(activation),
            out_shape=out_shape,
            grid=(n, num_t),
            in_specs=[pl.BlockSpec((1, ckp, tile_hw), lambda b, j: (b, 0, j)),
                      pl.BlockSpec((coutp, ckp), lambda b, j: (0, 0)),
                      pl.BlockSpec((coutp, 1), lambda b, j: (0, 0)),
                      smem_spec],
            out_specs=pl.BlockSpec((1, coutp, tile_hw), lambda b, j: (b, 0, j)),
            compiler_params=cparams_par,
        )(xt, wt, bias_p, alpha_arr)
    else:
        gamma_p = jnp.pad(gamma.astype(jnp.float32), (0, coutp - cout),
                          constant_values=1.0).reshape(coutp, 1)
        beta_p = jnp.pad(beta.astype(jnp.float32),
                         (0, coutp - cout)).reshape(coutp, 1)
        # Conv bias intentionally skipped: cancels exactly under training-mode BN.
        if fuse:
            cparams_fused = pltpu.CompilerParams(
                dimension_semantics=("arbitrary", "arbitrary", "arbitrary"),
                vmem_limit_bytes=vmem_limit)
            out_t = pl.pallas_call(
                _make_fused_bn_kernel(activation, num_t, m_total, eps),
                out_shape=out_shape,
                grid=(2, n, num_t),
                in_specs=[
                    # xt is only streamed during phase 0; pinned to block 0 in phase 1.
                    pl.BlockSpec((1, ckp, tile_hw),
                                 lambda p, b, j: (b * (1 - p), 0, j * (1 - p))),
                    pl.BlockSpec((coutp, ckp), lambda p, b, j: (0, 0)),
                    pl.BlockSpec((coutp, 1), lambda p, b, j: (0, 0)),
                    pl.BlockSpec((coutp, 1), lambda p, b, j: (0, 0)),
                    smem_spec,
                ],
                # output blocks are only produced during phase 1.
                out_specs=pl.BlockSpec((1, coutp, tile_hw),
                                       lambda p, b, j: (b * p, 0, j * p)),
                scratch_shapes=[
                    pltpu.VMEM((n * num_t, coutp, tile_hw), jnp.float32),  # conv result
                    pltpu.VMEM((coutp, 1), jnp.float32),                   # sum
                    pltpu.VMEM((coutp, 1), jnp.float32),                   # sumsq
                    pltpu.VMEM((coutp, 1), jnp.float32),                   # scale
                    pltpu.VMEM((coutp, 1), jnp.float32),                   # shift
                ],
                compiler_params=cparams_fused,
            )(xt, wt, gamma_p, beta_p, alpha_arr)
        else:
            # Fallback: conv result too large for VMEM -> two passes through HBM.
            conv_t, sum_part, ssq_part = pl.pallas_call(
                _conv_stats_kernel,
                out_shape=(
                    jax.ShapeDtypeStruct((n, coutp, hwp), jnp.float32),
                    jax.ShapeDtypeStruct((n, num_t, coutp, 1), jnp.float32),
                    jax.ShapeDtypeStruct((n, num_t, coutp, 1), jnp.float32),
                ),
                grid=(n, num_t),
                in_specs=[pl.BlockSpec((1, ckp, tile_hw), lambda b, j: (b, 0, j)),
                          pl.BlockSpec((coutp, ckp), lambda b, j: (0, 0))],
                out_specs=(
                    pl.BlockSpec((1, coutp, tile_hw), lambda b, j: (b, 0, j)),
                    pl.BlockSpec((1, 1, coutp, 1), lambda b, j: (b, j, 0, 0)),
                    pl.BlockSpec((1, 1, coutp, 1), lambda b, j: (b, j, 0, 0)),
                ),
                compiler_params=cparams_par,
            )(xt, wt)
            s = jnp.sum(sum_part, axis=(0, 1))                # (coutp, 1)
            ss = jnp.sum(ssq_part, axis=(0, 1))
            mean = s / m_total
            var = jnp.maximum(ss / m_total - mean * mean, 0.0)
            scale = gamma_p * jax.lax.rsqrt(var + eps)
            shift = beta_p - mean * scale
            out_t = pl.pallas_call(
                _make_scale_shift_act_kernel(activation),
                out_shape=out_shape,
                grid=(n, num_t),
                in_specs=[pl.BlockSpec((1, coutp, tile_hw), lambda b, j: (b, 0, j)),
                          pl.BlockSpec((coutp, 1), lambda b, j: (0, 0)),
                          pl.BlockSpec((coutp, 1), lambda b, j: (0, 0)),
                          smem_spec],
                out_specs=pl.BlockSpec((1, coutp, tile_hw), lambda b, j: (b, 0, j)),
                compiler_params=cparams_par,
            )(conv_t, scale, shift, alpha_arr)

    # (N, Coutp, HWp) -> (N, Cout, Hout, Wout): slice + reshape only, no transpose.
    return out_t[:, :cout, :hw].reshape(n, cout, hout, wout)


# ----------------------------- reference ------------------------------------


def _reference_forward(x, w, b, gamma, beta, alpha, *, stride, pad, activation,
                       is_bn):
    """Pure-JAX reference mirroring the PyTorch module (training-mode BN)."""
    y = jax.lax.conv_general_dilated(
        x, w, window_strides=(stride, stride),
        padding=((pad, pad), (pad, pad)),
        dimension_numbers=("NCHW", "OIHW", "NCHW"),
    ) + b[None, :, None, None]
    if is_bn:
        mean = y.mean(axis=(0, 2, 3), keepdims=True)
        var = ((y - mean) ** 2).mean(axis=(0, 2, 3), keepdims=True)
        y = (y - mean) / jnp.sqrt(var + 1e-5)
        y = y * gamma[None, :, None, None] + beta[None, :, None, None]
    if activation == "prelu":
        y = jnp.where(y >= 0, y, alpha * y)
    elif activation == "leakyrelu":
        y = jnp.where(y >= 0, y, 0.2 * y)
    elif activation == "tanh":
        y = jnp.tanh(y)
    return y


if __name__ == "__main__":
    # ConvolutionalBlock(in_channels=4, out_channels=8, kernel_size=3,
    #                    stride=1, activation='prelu', is_bn=True)
    N, CIN, H, W = 2, 4, 16, 16
    COUT, K = 8, 3

    key = jax.random.PRNGKey(0)
    k_w, k_b, k_x = jax.random.split(key, 3)

    fan_in = CIN * K * K
    bound = 1.0 / math.sqrt(fan_in)     # PyTorch Conv2d default init bounds
    weight = jax.random.uniform(k_w, (COUT, CIN, K, K), jnp.float32, -bound, bound)
    bias = jax.random.uniform(k_b, (COUT,), jnp.float32, -bound, bound)
    gamma = jnp.ones((COUT,), jnp.float32)   # BatchNorm2d defaults
    beta = jnp.zeros((COUT,), jnp.float32)
    alpha = jnp.float32(0.25)                # PReLU default

    x = jax.random.normal(k_x, (N, CIN, H, W), jnp.float32)

    # --- main config: stride=1, BN + PReLU (fused single pallas_call path) ---
    fwd = jax.jit(functools.partial(
        conv_block_forward, kernel_size=K, stride=1,
        activation="prelu", is_bn=True))
    y = jax.block_until_ready(fwd(x, weight, bias, gamma, beta, alpha))
    y_ref = _reference_forward(x, weight, bias, gamma, beta, alpha,
                               stride=1, pad=K // 2, activation="prelu",
                               is_bn=True)
    assert y.shape == y_ref.shape == (N, COUT, H, W)
    assert jnp.allclose(y, y_ref, atol=1e-3, rtol=1e-3), (
        float(jnp.max(jnp.abs(y - y_ref))))

    # --- secondary config: stride=2, no BN, LeakyReLU (single-pass kernel) ---
    fwd2 = jax.jit(functools.partial(
        conv_block_forward, kernel_size=K, stride=2,
        activation="leakyrelu", is_bn=False))
    y2 = jax.block_until_ready(fwd2(x, weight, bias, gamma, beta, alpha))
    y2_ref = _reference_forward(x, weight, bias, gamma, beta, alpha,
                                stride=2, pad=K // 2, activation="leakyrelu",
                                is_bn=False)
    assert y2.shape == y2_ref.shape == (N, COUT, 8, 8)
    assert jnp.allclose(y2, y2_ref, atol=1e-3, rtol=1e-3), (
        float(jnp.max(jnp.abs(y2 - y2_ref))))

    print("KERNEL_OK")
</pallas_src>

<mosaic_0001>
module attributes {stable_mosaic.version = 11 : i64} {
  func.func @kernel(%arg0: i32, %arg1: i32, %arg2: i32, %arg3: memref<1x40x256xf32, #tpu.memory_space<vmem>>, %arg4: memref<8x40xf32, #tpu.memory_space<vmem>>, %arg5: memref<8x1xf32, #tpu.memory_space<vmem>>, %arg6: memref<8x1xf32, #tpu.memory_space<vmem>>, %arg7: memref<1xf32, #tpu.memory_space<smem>>, %arg8: memref<1x8x256xf32, #tpu.memory_space<vmem>>, %arg9: memref<2x8x256xf32, #tpu.memory_space<vmem>>, %arg10: memref<8x1xf32, #tpu.memory_space<vmem>>, %arg11: memref<8x1xf32, #tpu.memory_space<vmem>>, %arg12: memref<8x1xf32, #tpu.memory_space<vmem>>, %arg13: memref<8x1xf32, #tpu.memory_space<vmem>>) attributes {dimension_semantics = [#tpu.dimension_semantics<arbitrary>, #tpu.dimension_semantics<arbitrary>, #tpu.dimension_semantics<arbitrary>], iteration_bounds = array<i64: 2, 2, 1>, scalar_prefetch = 0 : i64, scratch_operands = 5 : i64, tpu.core_type = #tpu.core_type<tc>, window_params = [{transform_indices = @transform_0, window_bounds = array<i64: 1, 40, 256>}, {pipeline_mode = #tpu.pipeline_mode<synchronous>, transform_indices = @transform_1, window_bounds = array<i64: 8, 40>}, {pipeline_mode = #tpu.pipeline_mode<synchronous>, transform_indices = @transform_2, window_bounds = array<i64: 8, 1>}, {pipeline_mode = #tpu.pipeline_mode<synchronous>, transform_indices = @transform_3, window_bounds = array<i64: 8, 1>}, {transform_indices = @transform_4, window_bounds = array<i64: 1>}, {transform_indices = @transform_5, window_bounds = array<i64: 1, 8, 256>}]} {
    %c1_i32 = arith.constant 1 : i32
    %0 = arith.muli %arg1, %c1_i32 : i32
    %1 = arith.addi %0, %arg2 : i32
    %c0_i32 = arith.constant 0 : i32
    %2 = arith.cmpi eq, %arg0, %c0_i32 : i32
    %3 = arith.extui %2 : i1 to i32
    %c0_i32_0 = arith.constant 0 : i32
    %4 = arith.cmpi ne, %3, %c0_i32_0 : i32
    scf.if %4 {
      %c0_i32_3 = arith.constant 0 : i32
      %8 = arith.cmpi eq, %arg1, %c0_i32_3 : i32
      %c0_i32_4 = arith.constant 0 : i32
      %9 = arith.cmpi eq, %arg2, %c0_i32_4 : i32
      %10 = arith.andi %8, %9 : i1
      %11 = arith.extui %10 : i1 to i32
      %c0_i32_5 = arith.constant 0 : i32
      %12 = arith.cmpi ne, %11, %c0_i32_5 : i32
      scf.if %12 {
        %cst_22 = arith.constant 0.000000e+00 : f32
        %32 = vector.broadcast %cst_22 : f32 to vector<8x1xf32>
        %c0_23 = arith.constant 0 : index
        %c0_24 = arith.constant 0 : index
        %33 = vector.load %arg10[%c0_23, %c0_24] : memref<8x1xf32, #tpu.memory_space<vmem>>, vector<8x1xf32>
        tpu.vector_store %arg10[%c0_23, %c0_24], %32 {strides = array<i32>} : memref<8x1xf32, #tpu.memory_space<vmem>>, vector<8x1xf32>,
        %cst_25 = arith.constant 0.000000e+00 : f32
        %34 = vector.broadcast %cst_25 : f32 to vector<8x1xf32>
        %c0_26 = arith.constant 0 : index
        %c0_27 = arith.constant 0 : index
        %35 = vector.load %arg11[%c0_26, %c0_27] : memref<8x1xf32, #tpu.memory_space<vmem>>, vector<8x1xf32>
        tpu.vector_store %arg11[%c0_26, %c0_27], %34 {strides = array<i32>} : memref<8x1xf32, #tpu.memory_space<vmem>>, vector<8x1xf32>,
      } else {
      }
      %c0 = arith.constant 0 : index
      %c0_6 = arith.constant 0 : index
      %13 = vector.load %arg4[%c0, %c0_6] : memref<8x40xf32, #tpu.memory_space<vmem>>, vector<8x40xf32>
      %c0_7 = arith.constant 0 : index
      %c0_8 = arith.constant 0 : index
      %c0_9 = arith.constant 0 : index
      %14 = vector.load %arg3[%c0_7, %c0_8, %c0_9] : memref<1x40x256xf32, #tpu.memory_space<vmem>>, vector<1x40x256xf32>
      %15 = vector.shape_cast %14 : vector<1x40x256xf32> to vector<40x256xf32>
      %cst = arith.constant dense<0.000000e+00> : vector<8x256xf32>
      %16 = tpu.matmul %13, %15, %cst {dimension_numbers = #tpu.dot_dimension_numbers<[1], [0], [0], [1], [0, 0, 1, 1], [], []>} : vector<8x40xf32>, vector<40x256xf32>, vector<8x256xf32> -> vector<8x256xf32>
      %c0_10 = arith.constant 0 : index
      %c0_11 = arith.constant 0 : index
      %17 = vector.load %arg10[%c0_10, %c0_11] : memref<8x1xf32, #tpu.memory_space<vmem>>, vector<8x1xf32>
      %cst_12 = arith.constant dense<0.000000e+00> : vector<8xf32>
      %18 = vector.multi_reduction <add>, %16, %cst_12 [1] : vector<8x256xf32> to vector<8xf32>
      %19 = vector.shape_cast %18 : vector<8xf32> to vector<8x1xf32>
      %20 = arith.addf %17, %19 : vector<8x1xf32>
      %c0_13 = arith.constant 0 : index
      %c0_14 = arith.constant 0 : index
      %21 = vector.load %arg10[%c0_13, %c0_14] : memref<8x1xf32, #tpu.memory_space<vmem>>, vector<8x1xf32>
      tpu.vector_store %arg10[%c0_13, %c0_14], %20 {strides = array<i32>} : memref<8x1xf32, #tpu.memory_space<vmem>>, vector<8x1xf32>,
      %c0_15 = arith.constant 0 : index
      %c0_16 = arith.constant 0 : index
      %22 = vector.load %arg11[%c0_15, %c0_16] : memref<8x1xf32, #tpu.memory_space<vmem>>, vector<8x1xf32>
      %23 = arith.mulf %16, %16 : vector<8x256xf32>
      %cst_17 = arith.constant dense<0.000000e+00> : vector<8xf32>
      %24 = vector.multi_reduction <add>, %23, %cst_17 [1] : vector<8x256xf32> to vector<8xf32>
      %25 = vector.shape_cast %24 : vector<8xf32> to vector<8x1xf32>
      %26 = arith.addf %22, %25 : vector<8x1xf32>
      %c0_18 = arith.constant 0 : index
      %c0_19 = arith.constant 0 : index
      %27 = vector.load %arg11[%c0_18, %c0_19] : memref<8x1xf32, #tpu.memory_space<vmem>>, vector<8x1xf32>
      tpu.vector_store %arg11[%c0_18, %c0_19], %26 {strides = array<i32>} : memref<8x1xf32, #tpu.memory_space<vmem>>, vector<8x1xf32>,
      %28 = arith.index_cast %1 : i32 to index
      %c0_20 = arith.constant 0 : index
      %c0_21 = arith.constant 0 : index
      %29 = vector.load %arg9[%28, %c0_20, %c0_21] : memref<2x8x256xf32, #tpu.memory_space<vmem>>, vector<1x8x256xf32>
      %30 = vector.shape_cast %29 : vector<1x8x256xf32> to vector<8x256xf32>
      %31 = vector.shape_cast %16 : vector<8x256xf32> to vector<1x8x256xf32>
      tpu.vector_store %arg9[%28, %c0_20, %c0_21], %31 {strides = array<i32>} : memref<2x8x256xf32, #tpu.memory_space<vmem>>, vector<1x8x256xf32>,
    } else {
    }
    %c1_i32_1 = arith.constant 1 : i32
    %5 = arith.cmpi eq, %arg0, %c1_i32_1 : i32
    %6 = arith.extui %5 : i1 to i32
    %c0_i32_2 = arith.constant 0 : i32
    %7 = arith.cmpi ne, %6, %c0_i32_2 : i32
    scf.if %7 {
      %c0_i32_3 = arith.constant 0 : i32
      %8 = arith.cmpi eq, %arg1, %c0_i32_3 : i32
      %c0_i32_4 = arith.constant 0 : i32
      %9 = arith.cmpi eq, %arg2, %c0_i32_4 : i32
      %10 = arith.andi %8, %9 : i1
      %11 = arith.extui %10 : i1 to i32
      %c0_i32_5 = arith.constant 0 : i32
      %12 = arith.cmpi ne, %11, %c0_i32_5 : i32
      scf.if %12 {
        %c0_15 = arith.constant 0 : index
        %c0_16 = arith.constant 0 : index
        %31 = vector.load %arg10[%c0_15, %c0_16] : memref<8x1xf32, #tpu.memory_space<vmem>>, vector<8x1xf32>
        %cst_17 = arith.constant 0.001953125 : f32
        %32 = vector.broadcast %cst_17 : f32 to vector<8x1xf32>
        %33 = arith.mulf %31, %32 : vector<8x1xf32>
        %c0_18 = arith.constant 0 : index
        %c0_19 = arith.constant 0 : index
        %34 = vector.load %arg11[%c0_18, %c0_19] : memref<8x1xf32, #tpu.memory_space<vmem>>, vector<8x1xf32>
        %cst_20 = arith.constant 0.001953125 : f32
        %35 = vector.broadcast %cst_20 : f32 to vector<8x1xf32>
        %36 = arith.mulf %34, %35 : vector<8x1xf32>
        %37 = arith.mulf %33, %33 : vector<8x1xf32>
        %38 = arith.subf %36, %37 : vector<8x1xf32>
        %cst_21 = arith.constant 0.000000e+00 : f32
        %39 = vector.broadcast %cst_21 : f32 to vector<8x1xf32>
        %40 = arith.maximumf %38, %39 : vector<8x1xf32>
        %c0_22 = arith.constant 0 : index
        %c0_23 = arith.constant 0 : index
        %41 = vector.load %arg5[%c0_22, %c0_23] : memref<8x1xf32, #tpu.memory_space<vmem>>, vector<8x1xf32>
        %cst_24 = arith.constant 9.99999974E-6 : f32
        %42 = vector.broadcast %cst_24 : f32 to vector<8x1xf32>
        %43 = arith.addf %40, %42 : vector<8x1xf32>
        %44 = math.rsqrt %43 : vector<8x1xf32>
        %45 = arith.mulf %41, %44 : vector<8x1xf32>
        %c0_25 = arith.constant 0 : index
        %c0_26 = arith.constant 0 : index
        %46 = vector.load %arg12[%c0_25, %c0_26] : memref<8x1xf32, #tpu.memory_space<vmem>>, vector<8x1xf32>
        tpu.vector_store %arg12[%c0_25, %c0_26], %45 {strides = array<i32>} : memref<8x1xf32, #tpu.memory_space<vmem>>, vector<8x1xf32>,
        %c0_27 = arith.constant 0 : index
        %c0_28 = arith.constant 0 : index
        %47 = vector.load %arg6[%c0_27, %c0_28] : memref<8x1xf32, #tpu.memory_space<vmem>>, vector<8x1xf32>
        %48 = arith.mulf %33, %45 : vector<8x1xf32>
        %49 = arith.subf %47, %48 : vector<8x1xf32>
        %c0_29 = arith.constant 0 : index
        %c0_30 = arith.constant 0 : index
        %50 = vector.load %arg13[%c0_29, %c0_30] : memref<8x1xf32, #tpu.memory_space<vmem>>, vector<8x1xf32>
        tpu.vector_store %arg13[%c0_29, %c0_30], %49 {strides = array<i32>} : memref<8x1xf32, #tpu.memory_space<vmem>>, vector<8x1xf32>,
      } else {
      }
      %13 = arith.index_cast %1 : i32 to index
      %c0 = arith.constant 0 : index
      %c0_6 = arith.constant 0 : index
      %14 = vector.load %arg9[%13, %c0, %c0_6] : memref<2x8x256xf32, #tpu.memory_space<vmem>>, vector<1x8x256xf32>
      %15 = vector.shape_cast %14 : vector<1x8x256xf32> to vector<8x256xf32>
      %c0_7 = arith.constant 0 : index
      %c0_8 = arith.constant 0 : index
      %16 = vector.load %arg12[%c0_7, %c0_8] : memref<8x1xf32, #tpu.memory_space<vmem>>, vector<8x1xf32>
      %17 = vector.broadcast %16 : vector<8x1xf32> to vector<8x256xf32>
      %18 = arith.mulf %15, %17 : vector<8x256xf32>
      %c0_9 = arith.constant 0 : index
      %c0_10 = arith.constant 0 : index
      %19 = vector.load %arg13[%c0_9, %c0_10] : memref<8x1xf32, #tpu.memory_space<vmem>>, vector<8x1xf32>
      %20 = vector.broadcast %19 : vector<8x1xf32> to vector<8x256xf32>
      %21 = arith.addf %18, %20 : vector<8x256xf32>
      %c0_11 = arith.constant 0 : index
      %22 = memref.load %arg7[%c0_11] : memref<1xf32, #tpu.memory_space<smem>>
      %cst = arith.constant 0.000000e+00 : f32
      %23 = vector.broadcast %cst : f32 to vector<8x256xf32>
      %24 = arith.cmpf oge, %21, %23 : vector<8x256xf32>
      %25 = vector.broadcast %22 : f32 to vector<8x256xf32>
      %26 = arith.mulf %25, %21 : vector<8x256xf32>
      %27 = arith.select %24, %21, %26 : vector<8x256xi1>, vector<8x256xf32>
      %c0_12 = arith.constant 0 : index
      %c0_13 = arith.constant 0 : index
      %c0_14 = arith.constant 0 : index
      %28 = vector.load %arg8[%c0_12, %c0_13, %c0_14] : memref<1x8x256xf32, #tpu.memory_space<vmem>>, vector<1x8x256xf32>
      %29 = vector.shape_cast %28 : vector<1x8x256xf32> to vector<8x256xf32>
      %30 = vector.shape_cast %27 : vector<8x256xf32> to vector<1x8x256xf32>
      tpu.vector_store %arg8[%c0_12, %c0_13, %c0_14], %30 {strides = array<i32>} : memref<1x8x256xf32, #tpu.memory_space<vmem>>, vector<1x8x256xf32>,
    } else {
    }
    return
  }
  func.func @transform_0(%arg0: i32, %arg1: i32, %arg2: i32) -> (i32, i32, i32) {
    %c1_i32 = arith.constant 1 : i32
    %0 = arith.subi %c1_i32, %arg0 : i32
    %1 = arith.muli %arg1, %0 : i32
    %c1_i32_0 = arith.constant 1 : i32
    %2 = arith.subi %c1_i32_0, %arg0 : i32
    %3 = arith.muli %arg2, %2 : i32
    %c0_i32 = arith.constant 0 : i32
    %c0_i32_1 = arith.constant 0 : i32
    return %1, %c0_i32, %3 : i32, i32, i32
  }
  func.func @transform_1(%arg0: i32, %arg1: i32, %arg2: i32) -> (i32, i32) {
    %c0_i32 = arith.constant 0 : i32
    %c0_i32_0 = arith.constant 0 : i32
    %c0_i32_1 = arith.constant 0 : i32
    return %c0_i32, %c0_i32_0 : i32, i32
  }
  func.func @transform_2(%arg0: i32, %arg1: i32, %arg2: i32) -> (i32, i32) {
    %c0_i32 = arith.constant 0 : i32
    %c0_i32_0 = arith.constant 0 : i32
    %c0_i32_1 = arith.constant 0 : i32
    return %c0_i32, %c0_i32_0 : i32, i32
  }
  func.func @transform_3(%arg0: i32, %arg1: i32, %arg2: i32) -> (i32, i32) {
    %c0_i32 = arith.constant 0 : i32
    %c0_i32_0 = arith.constant 0 : i32
    %c0_i32_1 = arith.constant 0 : i32
    return %c0_i32, %c0_i32_0 : i32, i32
  }
  func.func @transform_4(%arg0: i32, %arg1: i32, %arg2: i32) -> i32 {
    %c0_i32 = arith.constant 0 : i32
    %c0_i32_0 = arith.constant 0 : i32
    return %c0_i32 : i32
  }
  func.func @transform_5(%arg0: i32, %arg1: i32, %arg2: i32) -> (i32, i32, i32) {
    %0 = arith.muli %arg1, %arg0 : i32
    %1 = arith.muli %arg2, %arg0 : i32
    %c0_i32 = arith.constant 0 : i32
    %c0_i32_0 = arith.constant 0 : i32
    return %0, %c0_i32, %1 : i32, i32, i32
  }
}

</mosaic_0001>

<bundles_post_ra>
// kernel: conv_block_forward.1
= control target key start
LH: loop header
LB: loop body
LE: loop exit
PB: predicated region body
PF: predicated region fallthrough
CT: control target
= control target key end

     0   :  { %s741_s20 = smov 0   ;;  %s743_s21 = smov 0   ;;  %s819_s0 = inlined_call_operand.vmem [shape: f32[2,40,256], index: 0, kind: input, shape index: {}]   ;;  %s820_s1 = inlined_call_operand.vmem [shape: f32[8,40], index: 1, kind: input, shape index: {}]   ;;  %s821_s2 = inlined_call_operand.vmem [shape: f32[8,1], index: 2, kind: input, shape index: {}]   ;;  %s822_s3 = inlined_call_operand.vmem [shape: f32[8,1], index: 3, kind: input, shape index: {}]   ;;  %s823_s4 = inlined_call_operand.<no memory space> [shape: f32[1], index: 4, kind: input, shape index: {}]   ;;  %s824_s5 = inlined_call_operand.vmem [shape: f32[2,8,256], index: 5, kind: output, shape index: {}]  }
   0x1   :  { %10 = sst [smem:[#allocation7]] %s823_s4  ;;  %s745_s22 = smov 0  }
   0x2   :  { %s747_s23 = smov 0   ;;  %s749_s24 = smov 0  }
   0x3 LB: > { %s31_s4 = sadd.s32 1, %s695_s22  ;;  %s35_s25 = sadd.s32 1, %s699_s23  ;;  %s703_s24 = sphi %s749_s24, %s16_s24   ;;  %s699_s23 = sphi %s747_s23, %s828_s23   ;;  %s695_s22 = sphi %s745_s22, %s827_s22   ;;  %s691_s21 = sphi %s743_s21, %s826_s21   ;;  %s687_s20 = sphi %s741_s20, %s825_s20  }
   0x4   : > { %p33_p0 = scmp.ge.s32.totalorder %s31_s4, 2  ;;  %p590_p1 = scmp.ge.s32.totalorder %s703_s24, 1 }
   0x5   : > { %p232_p2 = scmp.lt.s32.totalorder %s703_s24, 5 }
   0x6   : > { %s830_s4 = smov (%p33_p0, %s31_s4), 0  ;;  %s832_s25 = smov (!%p33_p0, %s35_s25), %s699_s23 }
   0x7   : > { %p233_p3 = pnand %p590_p1, %p232_p2  ;;  %p37_p4 = scmp.ge.s32.totalorder %s832_s25, 2 }
   0x8   : > { %s273_s26 = ssub.s32 (!%p233_p3), 1, %s691_s21  ;;  %s289_s27 = smul.u32 (!%p233_p3), %s687_s20, %s691_s21 }
   0x9   : > { %s834_s25 = smov (%p37_p4, %s832_s25), 0  ;;  %236 = sbr.rel (%p233_p3) target bundleno = 588 (0x24c), region = 40 }
   0xa   : > { %s274_s28 = smul.u32 (!%p233_p3), %s687_s20, %s273_s26  ;;  %p292_p5 = scmp.lt.s32.totalorder (!%p233_p3), %s289_s27, 1 }
   0xb   : > { %p594_p7 = scmp.ne.s32.totalorder (!%p233_p3), %s691_s21, 0 }
   0xc   : > { %p277_p6 = scmp.lt.s32.totalorder (!%p233_p3), %s274_s28, 1 }
  0x10   : > { %s836_s27 = smov (!%p292_p5, %s289_s27), 1  ;;  %s838_s28 = smov (!%p277_p6, %s274_s28), 1 }
  0x11   : > { %s605_s29 = sshll.u32 %s836_s27, 4  ;;  %s618_s30 = smul.u32 80, %s838_s28 }
  0x12   : > { %s782_s8 = scalar_lea.vmem %s824_s5, %s605_s29  ;;  %307 = sbr.rel (%p594_p7) target bundleno = 409 (0x199), region = 44 }
  0x13   : > { %s284_s11 = scalar_lea.vmem %s819_s0, %s618_s30  ;;  %p308_p8 = scmp.eq.s32.totalorder (!%p594_p7), %s687_s20, 0 }
  0x19   : > { %313 = sbr.rel (!%p308_p8) target bundleno = 32 (0x20), region = 48  ;;  %vm314_vm0 = vcmask (%p308_p8), 7168   ;;  %v705_v0 = vmov (%p308_p8), 0.0  }
  0x1a   : > { %315 = vst.msk [vmem:[#allocation3] sm:$0xff] (%p308_p8), %vm314_vm0, %v705_v0  ;;  %316 = vst.msk [vmem:[#allocation4] sm:$0xff] (%p308_p8), %vm314_vm0, %v705_v0 }
  0x20 PF: > { %v319_v1 = vld [vmem:[%s284_s11 + $0x8] sm:$0xff]  ;;  %v321_v2 = vld [vmem:[%s284_s11 + $0x18] sm:$0xff]  ;;  %v318_v3 = vld [vmem:[%s284_s11] sm:$0xff]  ;;  %v706_v8 = vmov 0.0   ;;  %vm328_vm1 = vcmask 326656   ;;  %s607_s14 = sshll.u32 %s687_s20, 4 }
  0x21   : > { %v610_v4 = vpack.c.bf16 %v321_v2, %v319_v1  ;;  %v320_v5 = vld [vmem:[%s284_s11 + $0x10] sm:$0xff]  ;;  %v323_v6 = vld [vmem:[%s284_s11 + $0x28] sm:$0xff]  ;;  %v325_v7 = vld [vmem:[%s284_s11 + $0x38] sm:$0xff]  ;;  %396 = vmatprep.mubr.f32.mxu0 %v706_v8  ;;  %s420_s15 = scalar_lea.vmem [#allocation2], %s607_s14  ;;  %vm408_vm2 = vcmask 7168  }
  0x22   : > { %v612_v9 = vpack.c.bf16 %v320_v5, %v318_v3  ;;  %v614_v10 = vpack.c.bf16 %v325_v7, %v323_v6  ;;  %v322_v11 = vld [vmem:[%s284_s11 + $0x20] sm:$0xff]  ;;  %v324_v12 = vld [vmem:[%s284_s11 + $0x30] sm:$0xff]  ;;  %v327_v14 = vld [vmem:[%s284_s11 + $0x48] sm:$0xff] }
  0x23   : > { %611 = vmatprep.subr.bf16.mxu0 %v610_v4  ;;  %v616_v13 = vpack.c.bf16 %v324_v12, %v322_v11  ;;  %v326_v15 = vld [vmem:[%s284_s11 + $0x40] sm:$0xff]  ;;  %v410_v26 = vld [vmem:[#allocation4] sm:$0xff] }
  0x24   : > { %613 = vmatpush1.bf16.msra.mxu0 %v612_v9  ;;  %v317_v16 = vld [vmem:[%s820_s1] sm:$0xff] }
  0x25   : > { %615 = vmatprep.subr.bf16.mxu0 %v614_v10  ;;  %v403_v23 = vld [vmem:[#allocation3] sm:$0xff] }
  0x28   : > { %617 = vmatpush1.bf16.msra.mxu0 %v616_v13 }
  0x29   : > { %340 = vmatprep.subr.mxu0 %v327_v14 }
  0x2c   : > { %341 = vmatpush1.msra.mxu0 %v326_v15 }
  0x2d   : > { %596 = vmatmul.mubr.msk.f32.vlgmr.msra.gmra.mrb[0].mxu0 %vm328_vm1, %v317_v16 }
 0x100   : > { %v398_v17 = vpop.f32.mrb[0].mxu0 }
 0x101   : > { %v400_v18 = vpop.f32.mrb[1].mxu0  ;;  %421 = vst [vmem:[%s420_s15] sm:$0xff] %v398_v17  ;;  %v411_v19 = vmul.f32 %v398_v17, %v398_v17 }
 0x102   : > { %v412_v20 = vmul.f32 %v400_v18, %v400_v18  ;;  %422 = vst [vmem:[%s420_s15 + $0x8] sm:$0xff] %v400_v18  ;;  %v404_v21 = vadd.f32 %v400_v18, %v398_v17 }
 0x104   : > { %405 = vadd.xlane.f32.xlu0 %v404_v21  ;;  %v413_v22 = vadd.f32 %v412_v20, %v411_v19 }
 0x108   : > { %414 = vadd.xlane.f32.xlu0 %v413_v22 }
 0x191   : > { %v406_v24 = vpop.xlane.xlu0 %405 }
 0x192   : > { %v407_v25 = vadd.f32 %v406_v24, %v403_v23 }
 0x194   : > { %409 = vst.msk [vmem:[#allocation3] sm:$0xff] %vm408_vm2, %v407_v25 }
 0x195   : > { %v415_v27 = vpop.xlane.xlu0 %414 }
 0x196   : > { %v416_v28 = vadd.f32 %v415_v27, %v410_v26 }
 0x198   : > { %417 = vst.msk [vmem:[#allocation4] sm:$0xff] %vm408_vm2, %v416_v28 }
 0x199 PF: > { %p599_p9 = scmp.ne.s32.totalorder %s691_s21, 1 }
 0x19a   : > { %p427_p10 = scmp.eq.s32.totalorder (!%p599_p9), %s687_s20, 0 }
 0x19b   : > { %426 = sbr.rel (%p599_p9) target bundleno = 588 (0x24c), region = 52 }
 0x1a2   : > { %432 = sbr.rel (!%p427_p10) target bundleno = 447 (0x1bf), region = 56  ;;  %v433_v29 = vld [vmem:[#allocation3] sm:$0xff] (%p427_p10)  ;;  %v435_v30 = vld [vmem:[#allocation4] sm:$0xff] (%p427_p10)  ;;  %vm444_vm3 = vcmask (%p427_p10), 7168  }
 0x1a3   : > { %v434_v31 = vmul.f32 (%p427_p10), 0.001953125, %v433_v29  ;;  %v436_v32 = vmul.f32 (%p427_p10), 0.001953125, %v435_v30  ;;  %v440_v37 = vld [vmem:[%s821_s2] sm:$0xff] (%p427_p10) }
 0x1a4   : > { %v446_v40 = vld [vmem:[%s822_s3] sm:$0xff] (%p427_p10) }
 0x1a5   : > { %v437_v33 = vmul.f32 (%p427_p10), %v434_v31, %v434_v31 }
 0x1a7   : > { %v438_v34 = vsub.f32 (%p427_p10), %v436_v32, %v437_v33 }
 0x1a9   : > { %v439_v35 = vmax.f32 %v438_v34, 0.0 }
 0x1ab   : > { %v441_v36 = vadd.f32 1e-05, %v439_v35 }
 0x1ad   : > { %662 = vrsqrt.f32 %v441_v36 }
 0x1b7   : > { %v663_v38 = vpop.eup %662 }
 0x1b8   : > { %v443_v39 = vmul.f32 %v663_v38, %v440_v37 }
 0x1ba   : > { %445 = vst.msk [vmem:[#allocation5] sm:$0xff] %vm444_vm3, %v443_v39  ;;  %v447_v41 = vmul.f32 %v443_v39, %v434_v31 }
 0x1bc   : > { %v448_v42 = vsub.f32 %v446_v40, %v447_v41 }
 0x1be   : > { %449 = vst.msk [vmem:[#allocation6] sm:$0xff] %vm444_vm3, %v448_v42 }
 0x1bf PF: > { %v707_v44 = vmov 0   ;;  %s609_s21 = sshll.u32 %s687_s20, 4  ;;  %s471_s26 = sld [smem:[#allocation7]] }
 0x1c0   : > { %664 = vset.pattern.permute.xlu0 %v707_v44  ;;  %s452_s27 = scalar_lea.vmem [#allocation2], %s609_s21 }
 0x1c1   : > { %v455_v43 = vld [vmem:[#allocation5] sm:$0xff]  ;;  %v453_v47 = vld [vmem:[%s452_s27] sm:$0xff]  ;;  %v454_v48 = vld [vmem:[%s452_s27 + $0x8] sm:$0xff] }
 0x1c2   : > { %458 = vperm.xlu0 %664, %v455_v43  }
 0x1c5   : > { %v463_v45 = vld [vmem:[#allocation6] sm:$0xff]  ;;  %v474_v51 = vstv %s471_s26 }
 0x1c6   : > { %466 = vperm.xlu0 %664, %v463_v45  }
 0x241   : > { %v459_v46 = vpop.permute.xlu0 %458 }
 0x242   : > { %v461_v49 = vmul.f32 %v459_v46, %v453_v47  ;;  %v462_v50 = vmul.f32 %v459_v46, %v454_v48 }
 0x245   : > { %v467_v52 = vpop.permute.xlu0 %466 }
 0x246   : > { %v469_v53 = vadd.f32 %v467_v52, %v461_v49  ;;  %v470_v54 = vadd.f32 %v467_v52, %v462_v50 }
 0x248   : > { %vm472_vm4 = vcmp.ge.f32.partialorder %v469_v53, 0.0  ;;  %vm473_vm5 = vcmp.ge.f32.partialorder %v470_v54, 0.0  ;;  %v475_v55 = vmul.f32 %v474_v51, %v469_v53  ;;  %v476_v56 = vmul.f32 %v474_v51, %v470_v54 }
 0x24a   : > { %v477_v57 = vsel %vm472_vm4, %v469_v53, %v475_v55  ;;  %v478_v58 = vsel %vm473_vm5, %v470_v54, %v476_v56 }
 0x24b   : > { %479 = vst [vmem:[%s782_s8] sm:$0xff] %v477_v57  ;;  %480 = vst [vmem:[%s782_s8 + $0x8] sm:$0xff] %v478_v58 }
 0x24c PF: > { %s16_s24 = sadd.s32 1, %s703_s24   ;;  %s825_s20 = smov %s695_s22 }
 0x24d   : > { %p13_p11 = scmp.ge.s32.totalorder %s16_s24, 6   ;;  %s826_s21 = smov %s699_s23 }
 0x24e   : > { %s827_s22 = smov %s830_s4  ;;  %s828_s23 = smov %s834_s25 }
 0x24f   :  { %15 = sbr.rel (!%p13_p11) target bundleno = 3 (0x3), region = 88 }

</bundles_post_ra>
